<compile_context>
chip_gen: v5e
topology: v5e:2x2
jax: 0.10.0
libtpu: 0.0.40
codegen_flags: <defaults>
</compile_context>

<pallas_src>
import math
import functools

import jax
import jax.numpy as jnp
from jax.experimental import pallas as pl
from jax.experimental.pallas import tpu as pltpu


def _round_up(x, m):
    return (x + m - 1) // m * m


def _default_batch_block(B, S, target_rows=1024):
    """Pick a divisor of B so each grid step handles ~<=target_rows rows,
    the grid has several (preferably >=4, even) steps for pipelining /
    v7x megacore, and the block row count is a multiple of 8 (sublane)."""
    divisors = [d for d in range(1, B + 1) if B % d == 0]
    feasible = [d for d in divisors if (d * S) % 8 == 0 or d == B]
    small = [d for d in feasible if d * S <= target_rows]
    if not small:
        small = [min(feasible)]

    def key(d):
        nb = B // d
        penalty = 0 if nb >= 4 else 4 - nb        # want enough steps to pipeline
        odd = 0 if nb % 2 == 0 else 1             # even grid -> v7x megacore split
        return (penalty, odd, -d)                 # then largest rows <= target

    return min(small, key=key)


def _attention_head_kernel(bb, S, Dpad, store_probs,
                           x_ref, w_ref, b_ref, *out_refs):
    """One grid step handles `bb` batch elements (rows = bb*S).

    x_ref:   (bb*S, H)       flattened activations (matmul_dtype)
    w_ref:   (H, 3*Dpad)     fused [wq@rf*scale | pad | wk@rf | pad | wv | pad]
    b_ref:   (1, 3*Dpad)     fused bias (f32), same lane-aligned segments
    out[0]:  (bb*S, Dpad)    attention_output (lane-dense, stored unmasked)
    out[1]:  (bb*S, Spad)    attention_probs  (only first S lanes written)
    """
    o_ref = out_refs[0]
    mm_dtype = x_ref.dtype

    x = x_ref[...]
    w = w_ref[...]

    # Single fused projection [q | k | v] on the MXU, f32 accumulation.
    qkv = jnp.dot(x, w, preferred_element_type=jnp.float32) + b_ref[...]

    # Lane-tile aligned views: each segment starts at a multiple of 128.
    qrf = qkv[:, 0:Dpad].reshape(bb, S, Dpad)
    krf = qkv[:, Dpad:2 * Dpad].reshape(bb, S, Dpad)
    v = qkv[:, 2 * Dpad:3 * Dpad].reshape(bb, S, Dpad)

    # attention_scores = qrf @ krf^T  (scale already folded into Q weights).
    scores = jnp.einsum("bqd,bkd->bqk",
                        qrf.astype(mm_dtype), krf.astype(mm_dtype),
                        preferred_element_type=jnp.float32)

    # Numerically stable softmax; exact reciprocal (probs is user-visible).
    m = jnp.max(scores, axis=-1, keepdims=True)
    e = jnp.exp(scores - m)
    probs = e / jnp.sum(e, axis=-1, keepdims=True)
    # TODO(synk): training-mode dropout on attention_probs is not applied
    # (kernel implements eval semantics).

    out = jnp.einsum("bqk,bkd->bqd",
                     probs.astype(mm_dtype), v.astype(mm_dtype),
                     preferred_element_type=jnp.float32)

    # Padded v columns are zero, so `out` is already lane-dense (Dpad wide).
    o_ref[...] = out.reshape(bb * S, Dpad).astype(o_ref.dtype)

    if store_probs:
        p_ref = out_refs[1]
        probs2d = probs.reshape(bb * S, S).astype(p_ref.dtype)
        if S == p_ref.shape[-1]:
            p_ref[...] = probs2d
        else:
            p_ref[:, 0:S] = probs2d     # pad lanes never written; sliced off later


def sm_ap_rf_attention_head(x, wq, bq, wk, bk, wv, bv, rf, *, input_size,
                            batch_block=None, matmul_dtype=jnp.bfloat16,
                            return_probs=True,
                            vmem_limit_bytes=48 * 1024 * 1024):
    """x: (B, S, H); wq/wk/wv: (H, D); bq/bk/bv: (D,); rf: (R, D) with R == D."""
    B, S, H = x.shape
    D = wq.shape[1]
    R = rf.shape[0]
    assert R == D, ("torch.matmul(query, random_features) requires "
                    "input_size == num_random_features")

    f32 = jnp.float32
    scale = 1.0 / math.sqrt(input_size)

    # Fold random_features and the 1/sqrt(input_size) scale into the Q/K
    # projections (exact linear identities):
    #   ((x@wq+bq)@rf)*s == x@(wq@rf*s) + bq@rf*s
    wq_f = jnp.dot(wq.astype(f32), rf.astype(f32), precision="highest") * scale
    bq_f = jnp.dot(bq.astype(f32), rf.astype(f32), precision="highest") * scale
    wk_f = jnp.dot(wk.astype(f32), rf.astype(f32), precision="highest")
    bk_f = jnp.dot(bk.astype(f32), rf.astype(f32), precision="highest")

    Dpad = _round_up(D, 128)
    Spad = _round_up(S, 128)

    def _pad_seg(w, b):
        if Dpad != D:
            w = jnp.pad(w, ((0, 0), (0, Dpad - D)))
            b = jnp.pad(b, (0, Dpad - D))
        return w, b

    wq_p, bq_p = _pad_seg(wq_f, bq_f)
    wk_p, bk_p = _pad_seg(wk_f, bk_f)
    wv_p, bv_p = _pad_seg(wv.astype(f32), bv.astype(f32))

    # Fused weight/bias; each Q/K/V segment starts on a 128-lane boundary.
    w_fused = jnp.concatenate([wq_p, wk_p, wv_p], axis=1).astype(matmul_dtype)
    b_fused = jnp.concatenate([bq_p, bk_p, bv_p]).reshape(1, 3 * Dpad).astype(f32)

    # --- Tiling: several pipelined grid steps instead of one big block ---
    if batch_block is None:
        batch_block = _default_batch_block(B, S)
    assert B % batch_block == 0, "batch_block must divide B"
    rows = batch_block * S
    n_blocks = B // batch_block
    assert rows % 8 == 0 or n_blocks == 1, (
        "batch_block*S must be a multiple of 8 (sublane tile) unless one grid "
        "step covers the whole batch")

    x2 = x.reshape(B * S, H).astype(matmul_dtype)

    kernel = functools.partial(_attention_head_kernel,
                               batch_block, S, Dpad, return_probs)

    out_shapes = [jax.ShapeDtypeStruct((B * S, Dpad), x.dtype)]
    out_specs = [pl.BlockSpec((rows, Dpad), lambda i: (i, 0))]
    if return_probs:
        out_shapes.append(jax.ShapeDtypeStruct((B * S, Spad), x.dtype))
        out_specs.append(pl.BlockSpec((rows, Spad), lambda i: (i, 0)))

    results = pl.pallas_call(
        kernel,
        out_shape=out_shapes,
        grid_spec=pltpu.PrefetchScalarGridSpec(
            num_scalar_prefetch=0,
            grid=(n_blocks,),
            in_specs=[
                pl.BlockSpec((rows, H), lambda i: (i, 0)),        # x rows
                pl.BlockSpec((H, 3 * Dpad), lambda i: (0, 0)),    # fused weight
                pl.BlockSpec((1, 3 * Dpad), lambda i: (0, 0)),    # fused bias
            ],
            out_specs=out_specs,
        ),
        compiler_params=pltpu.CompilerParams(
            dimension_semantics=("parallel",),
            vmem_limit_bytes=vmem_limit_bytes),
    )(x2, w_fused, b_fused)

    out = results[0][:, :D].reshape(B, S, D)
    if not return_probs:
        return out, None
    probs = results[1][:, :S].reshape(B, S, S)
    return out, probs


def _reference(x, wq, bq, wk, bk, wv, bv, rf, *, input_size):
    hp = "highest"
    q = jnp.einsum("bsh,hd->bsd", x, wq, precision=hp) + bq
    k = jnp.einsum("bsh,hd->bsd", x, wk, precision=hp) + bk
    v = jnp.einsum("bsh,hd->bsd", x, wv, precision=hp) + bv
    qrf = jnp.einsum("bsd,dr->bsr", q, rf, precision=hp)
    krf = jnp.einsum("bsd,dr->bsr", k, rf, precision=hp)
    scores = jnp.einsum("bqr,bkr->bqk", qrf, krf, precision=hp) / math.sqrt(input_size)
    probs = jax.nn.softmax(scores, axis=-1)
    out = jnp.einsum("bqk,bkd->bqd", probs, v, precision=hp)
    return out, probs


if __name__ == "__main__":
    # Small shapes consistent with the module's forward:
    B, S = 2, 8
    hidden_size = 32            # H
    input_size = 32             # D
    num_random_features = 32    # R (must equal D for the torch matmul to be valid)

    key = jax.random.PRNGKey(0)
    kx, krf_, kq, kqb, kk_, kkb, kv_, kvb = jax.random.split(key, 8)

    x = jax.random.normal(kx, (B, S, hidden_size), dtype=jnp.float32)

    # Deterministic parameter init (shapes from __init__).
    rf = (jax.random.normal(krf_, (num_random_features, input_size), jnp.float32)
          / math.sqrt(input_size))
    lin_scale = 1.0 / math.sqrt(hidden_size)
    wq = jax.random.uniform(kq, (hidden_size, input_size), jnp.float32, -lin_scale, lin_scale)
    bq = jax.random.uniform(kqb, (input_size,), jnp.float32, -lin_scale, lin_scale)
    wk = jax.random.uniform(kk_, (hidden_size, input_size), jnp.float32, -lin_scale, lin_scale)
    bk = jax.random.uniform(kkb, (input_size,), jnp.float32, -lin_scale, lin_scale)
    wv = jax.random.uniform(kv_, (hidden_size, input_size), jnp.float32, -lin_scale, lin_scale)
    bv = jax.random.uniform(kvb, (input_size,), jnp.float32, -lin_scale, lin_scale)

    ref_out, ref_probs = _reference(
        x, wq, bq, wk, bk, wv, bv, rf, input_size=input_size)

    # f32 MXU path (algorithmic-correctness check, tight tolerance).
    out32, probs32 = sm_ap_rf_attention_head(
        x, wq, bq, wk, bk, wv, bv, rf, input_size=input_size,
        matmul_dtype=jnp.float32)
    jax.block_until_ready((out32, probs32))
    assert jnp.allclose(out32, ref_out, atol=2e-3, rtol=2e-3), \
        float(jnp.max(jnp.abs(out32 - ref_out)))
    assert jnp.allclose(probs32, ref_probs, atol=2e-3, rtol=2e-3), \
        float(jnp.max(jnp.abs(probs32 - ref_probs)))

    # Default bf16-operand / f32-accumulate MXU path (perf path, looser tol).
    out_bf, probs_bf = sm_ap_rf_attention_head(
        x, wq, bq, wk, bk, wv, bv, rf, input_size=input_size)
    jax.block_until_ready((out_bf, probs_bf))
    assert jnp.allclose(out_bf, ref_out, atol=3e-2, rtol=3e-2), \
        float(jnp.max(jnp.abs(out_bf - ref_out)))
    assert jnp.allclose(probs_bf, ref_probs, atol=3e-2, rtol=3e-2), \
        float(jnp.max(jnp.abs(probs_bf - ref_probs)))

    print("KERNEL_OK")
</pallas_src>

<mosaic_0001>
module attributes {stable_mosaic.version = 11 : i64} {
  func.func @_attention_head_kernel(%arg0: i32, %arg1: memref<8x32xf32, #tpu.memory_space<vmem>>, %arg2: memref<32x384xf32, #tpu.memory_space<vmem>>, %arg3: memref<1x384xf32, #tpu.memory_space<vmem>>, %arg4: memref<8x128xf32, #tpu.memory_space<vmem>>, %arg5: memref<8x128xf32, #tpu.memory_space<vmem>>) attributes {dimension_semantics = [#tpu.dimension_semantics<parallel>], iteration_bounds = array<i64: 2>, scalar_prefetch = 0 : i64, scratch_operands = 0 : i64, tpu.core_type = #tpu.core_type<tc>, window_params = [{transform_indices = @transform_0, window_bounds = array<i64: 8, 32>}, {pipeline_mode = #tpu.pipeline_mode<synchronous>, transform_indices = @transform_1, window_bounds = array<i64: 32, 384>}, {pipeline_mode = #tpu.pipeline_mode<synchronous>, transform_indices = @transform_2, window_bounds = array<i64: 1, 384>}, {transform_indices = @transform_3, window_bounds = array<i64: 8, 128>}, {transform_indices = @transform_4, window_bounds = array<i64: 8, 128>}]} {
    %c0 = arith.constant 0 : index
    %c0_0 = arith.constant 0 : index
    %0 = vector.load %arg1[%c0, %c0_0] : memref<8x32xf32, #tpu.memory_space<vmem>>, vector<8x32xf32>
    %c0_1 = arith.constant 0 : index
    %c0_2 = arith.constant 0 : index
    %1 = vector.load %arg2[%c0_1, %c0_2] : memref<32x384xf32, #tpu.memory_space<vmem>>, vector<32x384xf32>
    %cst = arith.constant dense<0.000000e+00> : vector<8x384xf32>
    %2 = tpu.matmul %0, %1, %cst {dimension_numbers = #tpu.dot_dimension_numbers<[1], [0], [0], [1], [0, 0, 1, 1], [], []>} : vector<8x32xf32>, vector<32x384xf32>, vector<8x384xf32> -> vector<8x384xf32>
    %c0_3 = arith.constant 0 : index
    %c0_4 = arith.constant 0 : index
    %3 = vector.load %arg3[%c0_3, %c0_4] : memref<1x384xf32, #tpu.memory_space<vmem>>, vector<1x384xf32>
    %4 = vector.broadcast %3 : vector<1x384xf32> to vector<8x384xf32>
    %5 = arith.addf %2, %4 : vector<8x384xf32>
    %6 = vector.extract_strided_slice %5 {offsets = [0, 0], sizes = [8, 128], strides = [1, 1]} : vector<8x384xf32> to vector<8x128xf32>
    %7 = vector.shape_cast %6 : vector<8x128xf32> to vector<1x8x128xf32>
    %8 = vector.extract_strided_slice %5 {offsets = [0, 128], sizes = [8, 128], strides = [1, 1]} : vector<8x384xf32> to vector<8x128xf32>
    %9 = vector.shape_cast %8 : vector<8x128xf32> to vector<1x8x128xf32>
    %10 = vector.extract_strided_slice %5 {offsets = [0, 256], sizes = [8, 128], strides = [1, 1]} : vector<8x384xf32> to vector<8x128xf32>
    %11 = vector.shape_cast %10 : vector<8x128xf32> to vector<1x8x128xf32>
    "tpu.trace_start"() <{level = 10 : i32, message = "bqd,bkd->bqk"}> : () -> ()
    %cst_5 = arith.constant dense<0.000000e+00> : vector<1x8x8xf32>
    %12 = tpu.matmul %7, %9, %cst_5 {dimension_numbers = #tpu.dot_dimension_numbers<[2], [2], [1], [1], [0, 0, 0, 1, 1, 1], [0], [0]>} : vector<1x8x128xf32>, vector<1x8x128xf32>, vector<1x8x8xf32> -> vector<1x8x8xf32>
    "tpu.trace_stop"() : () -> ()
    %cst_6 = arith.constant dense<0xFF800000> : vector<1x8xf32>
    %13 = vector.multi_reduction <maximumf>, %12, %cst_6 [2] : vector<1x8x8xf32> to vector<1x8xf32>
    %14 = vector.shape_cast %13 : vector<1x8xf32> to vector<1x8x1xf32>
    %15 = vector.broadcast %14 : vector<1x8x1xf32> to vector<1x8x8xf32>
    %16 = arith.subf %12, %15 : vector<1x8x8xf32>
    %17 = math.exp %16 : vector<1x8x8xf32>
    %cst_7 = arith.constant dense<0.000000e+00> : vector<1x8xf32>
    %18 = vector.multi_reduction <add>, %17, %cst_7 [2] : vector<1x8x8xf32> to vector<1x8xf32>
    %19 = vector.shape_cast %18 : vector<1x8xf32> to vector<1x8x1xf32>
    %20 = vector.broadcast %19 : vector<1x8x1xf32> to vector<1x8x8xf32>
    %21 = arith.divf %17, %20 : vector<1x8x8xf32>
    "tpu.trace_start"() <{level = 10 : i32, message = "bqk,bkd->bqd"}> : () -> ()
    %cst_8 = arith.constant dense<0.000000e+00> : vector<1x8x128xf32>
    %22 = tpu.matmul %21, %11, %cst_8 {dimension_numbers = #tpu.dot_dimension_numbers<[2], [1], [1], [2], [0, 0, 0, 1, 1, 2], [0], [0]>} : vector<1x8x8xf32>, vector<1x8x128xf32>, vector<1x8x128xf32> -> vector<1x8x128xf32>
    "tpu.trace_stop"() : () -> ()
    %23 = vector.shape_cast %22 : vector<1x8x128xf32> to vector<8x128xf32>
    %c0_9 = arith.constant 0 : index
    %c0_10 = arith.constant 0 : index
    %24 = vector.load %arg4[%c0_9, %c0_10] : memref<8x128xf32, #tpu.memory_space<vmem>>, vector<8x128xf32>
    tpu.vector_store %arg4[%c0_9, %c0_10], %23 {strides = array<i32>} : memref<8x128xf32, #tpu.memory_space<vmem>>, vector<8x128xf32>,
    %25 = vector.shape_cast %21 : vector<1x8x8xf32> to vector<8x8xf32>
    %c0_11 = arith.constant 0 : index
    %c0_12 = arith.constant 0 : index
    %26 = vector.load %arg5[%c0_11, %c0_12] : memref<8x128xf32, #tpu.memory_space<vmem>>, vector<8x8xf32>
    tpu.vector_store %arg5[%c0_11, %c0_12], %25 {strides = array<i32>} : memref<8x128xf32, #tpu.memory_space<vmem>>, vector<8x8xf32>,
    return
  }
  func.func @transform_0(%arg0: i32) -> (i32, i32) {
    %c0_i32 = arith.constant 0 : i32
    %c0_i32_0 = arith.constant 0 : i32
    return %arg0, %c0_i32 : i32, i32
  }
  func.func @transform_1(%arg0: i32) -> (i32, i32) {
    %c0_i32 = arith.constant 0 : i32
    %c0_i32_0 = arith.constant 0 : i32
    %c0_i32_1 = arith.constant 0 : i32
    return %c0_i32, %c0_i32_0 : i32, i32
  }
  func.func @transform_2(%arg0: i32) -> (i32, i32) {
    %c0_i32 = arith.constant 0 : i32
    %c0_i32_0 = arith.constant 0 : i32
    %c0_i32_1 = arith.constant 0 : i32
    return %c0_i32, %c0_i32_0 : i32, i32
  }
  func.func @transform_3(%arg0: i32) -> (i32, i32) {
    %c0_i32 = arith.constant 0 : i32
    %c0_i32_0 = arith.constant 0 : i32
    return %arg0, %c0_i32 : i32, i32
  }
  func.func @transform_4(%arg0: i32) -> (i32, i32) {
    %c0_i32 = arith.constant 0 : i32
    %c0_i32_0 = arith.constant 0 : i32
    return %arg0, %c0_i32 : i32, i32
  }
}

</mosaic_0001>

<bundles_post_ra>
// kernel: tpu_custom_call.1
= control target key start
LH: loop header
LB: loop body
LE: loop exit
PB: predicated region body
PF: predicated region fallthrough
CT: control target
= control target key end

     0   :  { %10 = vsyncpa [#allocation3], 0  ;;  %s1064_s0 = inlined_call_operand.hbm [shape: f32[16,32], index: 0, kind: input, shape index: {}]   ;;  %s1065_s1 = inlined_call_operand.hbm [shape: f32[32,384], index: 1, kind: input, shape index: {}]   ;;  %s1066_s2 = inlined_call_operand.hbm [shape: f32[1,384], index: 2, kind: input, shape index: {}]   ;;  %s1067_s3 = inlined_call_operand.hbm [shape: f32[16,128], index: 3, kind: output, shape index: {0}]   ;;  %s1068_s4 = inlined_call_operand.hbm [shape: f32[16,128], index: 4, kind: output, shape index: {1}]  }
   0x1   :  { %12 = vsyncpa [#allocation3 + $0x1], 0 }
   0x2   :  { %13 = vsyncpa [#allocation6], 0 }
   0x3   :  { %14 = vsyncpa [#allocation4], 0 }
   0x4   :  { %16 = vsyncpa [#allocation4 + $0x1], 0 }
   0x5   :  { %17 = vsyncpa [#allocation10], 0 }
   0x6   :  { %19 = vsyncpa [#allocation10 + $0x1], 0  ;;  %s893_s15 = smov 0   ;;  %s895_s16 = smov 0  }
   0x7   :  { %s897_s17 = smov 0   ;;  %s899_s18 = smov 0  }
   0x8 LB: > { %s161_s21 = sshll.u32 %s1065_s1, 4  ;;  %s917_s22 = sadd.s32 4294967295, %s862_s18   ;;  %s862_s18 = sphi %s899_s18, %s1079_s18   ;;  %s858_s17 = sphi %s897_s17, %s1078_s17   ;;  %s854_s16 = sphi %s895_s16, %s1077_s16   ;;  %s850_s15 = sphi %s893_s15, %s1076_s15   ;;  %s162_s21 = int_to_ptr.hbm [resolvable:$true] %s161_s21 }
   0x9   : > { %p570_p0 = scmp.ge.s32.totalorder %s862_s18, 1  ;;  %p46_p1 = scmp.eq.s32.totalorder %s917_s22, 0 }
   0xa   : > { %p150_p2 = scmp.lt.s32.totalorder %s862_s18, 3  ;;  %s864_s24 = smov [#allocation5]  }
   0xb   : > { %s163_s25 = sshll.u32 %s864_s24, 4  ;;  %s176_s28 = sshll.u32 %s1066_s2, 4  ;;  %s164_s25 = int_to_ptr.vmem [resolvable:$true] %s163_s25  ;;  %s177_s28 = int_to_ptr.hbm [resolvable:$true] %s176_s28 }
   0xc   : > { %p922_p3 = pnand %p570_p0, %p150_p2  ;;  %s865_s29 = smov [#allocation7]  }
   0xd   : > { %s178_s30 = sshll.u32 %s865_s29, 4  ;;  %s866_s5 = smov 384   ;;  %s179_s30 = int_to_ptr.vmem [resolvable:$true] %s178_s30 }
   0xe   : > { %p606_p4 = pneg %p922_p3  ;;  %s867_s6 = smov 24  }
   0xf   : > { %s569_s7 = sadd.s32 4294967294, %s862_s18   ;;  %s936_s8 = sadd.s32 1, %s862_s18  }
  0x10   : > { %p607_p6 = pnand %p606_p4, %p46_p1  ;;  %s29_s9 = ssub.s32 %s862_s18, %s936_s8 }
  0x11   : > { %s32_s10 = sadd.s32 1, %s858_s17  ;;  %p30_p7 = scmp.eq.s32.totalorder %s29_s9, 0 }
  0x12   : > { %609 = dma.hbm_to_vmem [thread:$0]  (!%p607_p6), %s162_s21, 1536, %s164_s25, [#allocation6], %s866_s5, %s866_s5, %s867_s6  }
  0x13   : > { %612 = dma.hbm_to_vmem [thread:$0]  (!%p607_p6), %s177_s28, 48, %s179_s30, [#allocation6]  }
  0x14   : > { %p39_p8 = scmp.ne.s32.totalorder %s858_s17, %s854_s16  ;;  %p40_p9 = scmp.eq.s32.totalorder %s862_s18, 0 }
  0x15   : > { %p45_p10 = scmp.ne.s32.totalorder %s854_s16, %s850_s15  ;;  %p111_p13 = scmp.eq.s32.totalorder %s917_s22, 1 }
  0x16   : > { %s947_s11 = scalar_select %p30_p7, %s858_s17, %s32_s10  }
  0x17   : > { %p949_p11 = por %p40_p9, %p39_p8  ;;  %p955_p12 = por %p46_p1, %p45_p10 }
  0x18   : > { %p117_p0 = scmp.eq.s32.totalorder %s569_s7, 1  ;;  %p626_p2 = scmp.lt.s32.totalorder %s862_s18, 2 }
  0x19   : > { %s189_s14 = sand.u32 1, %s858_s17   ;;  %p962_p4 = por %p111_p13, %p39_p8 }
  0x1a   : > { %p966_p6 = por %p117_p0, %p45_p10  ;;  %s574_s21 = sshll.u32 %s189_s14, 3 }
  0x1b   : > { %s575_s24 = sshll.u32 %s862_s18, 3  ;;  %s193_s28 = scalar_lea.vmem [#allocation2], %s574_s21 }
  0x1c   : > { %s197_s27 = scalar_lea.hbm %s1064_s0, %s575_s24  ;;  %s201_s29 = sshll.u32 %s193_s28, 4  ;;  %s202_s29 = int_to_ptr.vmem [resolvable:$true] %s201_s29 }
  0x1d   : > { %s199_s30 = sshll.u32 %s197_s27, 4  ;;  %p976_p7 = pnand %p626_p2, %p949_p11  ;;  %s200_s30 = int_to_ptr.hbm [resolvable:$true] %s199_s30 }
  0x1e   : > { %s190_s6 = scalar_lea.sflag [#allocation3], %s189_s14  ;;  %s730_s7 = sshra.s32 %s200_s30, 4  ;;  %s731_s7 = int_to_ptr.hbm [resolvable:$true] %s730_s7 }
  0x1f   : > { %s732_s9 = scalar_lea.hbm %s731_s7, 8  ;;  %p734_p9 = pneg %p976_p7 }
  0x20   : > { %p733_p8 = scmp.ne.s32.totalorder %s731_s7, %s732_s9  ;;  %s737_s24 = scalar_lea.hbm %s1064_s0, 16 }
  0x21   : > { %p738_p11 = scmp.lt.s32.totalorder %s731_s7, %s1064_s0  ;;  %p739_p0 = scmp.lt.s32.totalorder %s737_s24, %s732_s9 }
  0x22   : > { %p735_p10 = pnand %p734_p9, %p733_p8 }
  0x23   : > { %p740_p2 = por %p739_p0, %p738_p11 }
  0x24   : > { %p736_p13 = pneg %p735_p10 }
  0x26   : > { %p741_p5 = pnand %p740_p2, %p736_p13 }
  0x28   : > { %744 = shalt.err (!%p741_p5)
}
  0x29   : > { %616 = dma.hbm_to_vmem [thread:$0]  (!%p976_p7), %s200_s30, 128, %s202_s29, %s190_s6  }
  0x2a   : > { %210 = sbr.rel (%p922_p3) target bundleno = 720 (0x2d0), region = 32  ;;  %s993_s14 = sand.u32 (!%p922_p3), 1, %s854_s16  }
  0x2b   : > { %s996_s26 = sshll.u32 (!%p922_p3), %s993_s14, 3  ;;  %s213_s27 = scalar_lea.sflag (!%p922_p3), [#allocation3], %s993_s14 }
  0x2c   : > { %s216_s28 = scalar_lea.vmem (!%p922_p3), [#allocation2], %s996_s26 }
  0x2f   : > { %833 = dma.done.wait (%p955_p12), %s213_s27, 128  }
  0x30   : > { %835 = vsyncadd (%p955_p12), %s213_s27, 4294967168 }
  0x31   : > { %837 = dma.done.wait (%p46_p1), [#allocation6], 1584  }
  0x32   : > { %839 = vsyncadd (%p46_p1), [#allocation6], 4294965712  ;;  %v268_v0 = vld [vmem:[#allocation5 + $0x50] sm:$0xff]  ;;  %v265_v1 = vld [vmem:[#allocation5 + $0x38] sm:$0xff]  ;;  %vm278_vm0 = vcmask 261120   ;;  %vm362_vm1 = vcmask 64512  }
  0x33   : > { %v267_v2 = vld [vmem:[#allocation5 + $0x48] sm:$0xff]  ;;  %314 = vmatpush.msra.mxu1 %v268_v0  ;;  %v264_v3 = vld [vmem:[#allocation5 + $0x30] sm:$0xff]  ;;  %v262_v4 = vld [vmem:[#allocation5 + $0x20] sm:$0xff]  ;;  %s256_s23 = scalar_lea.vmem [#allocation9], %s996_s26  ;;  %s588_s13 = sshll.u32 %s917_s22, 3 }
  0x34   : > { %294 = vmatpush.msra.mxu0 %v267_v2  ;;  %v261_v5 = vld [vmem:[#allocation5 + $0x18] sm:$0xff]  ;;  %v259_v6 = vld [vmem:[#allocation5 + $0x8] sm:$0xff]  ;;  %v258_v7 = vld [vmem:[#allocation5] sm:$0xff]  ;;  %s442_s5 = scalar_lea.hbm %s1068_s4, %s588_s13  ;;  %s444_s6 = sshll.u32 %s256_s23, 4  ;;  %s445_s6 = int_to_ptr.vmem [resolvable:$true] %s444_s6 }
  0x35   : > { %315 = vmatpush.msra.mxu1 %v265_v1  ;;  %v257_v8 = vld [vmem:[%s216_s28] sm:$0xff]  ;;  %v270_v9 = vld [vmem:[#allocation7] sm:$0x7]  ;;  %v263_v20 = vld [vmem:[#allocation5 + $0x28] sm:$0xff]  ;;  %s446_s7 = sshll.u32 %s442_s5, 4  ;;  %s418_s9 = scalar_lea.sflag [#allocation10], %s993_s14  ;;  %s447_s7 = int_to_ptr.hbm [resolvable:$true] %s446_s7 }
  0x36   : > { %295 = vmatpush.msra.mxu0 %v264_v3  ;;  %v273_v10 = vperm.slane %v270_v9, 1  ;;  %v272_v11 = vperm.slane %v270_v9, 0  ;;  %v269_v16 = vld [vmem:[#allocation5 + $0x58] sm:$0xff]  ;;  %v266_v19 = vld [vmem:[#allocation5 + $0x40] sm:$0xff]  ;;  %v260_v21 = vld [vmem:[#allocation5 + $0x10] sm:$0xff]  ;;  %v274_v27 = vperm.slane %v270_v9, 2 }
  0x37   : > { %316 = vmatpush.msra.mxu1 %v262_v4  ;;  %334 = vmatpush.msra.mxu2 %v269_v16  ;;  %s774_s10 = sshra.s32 %s447_s7, 4  ;;  %s780_s22 = scalar_lea.hbm %s1068_s4, 16  ;;  %s775_s10 = int_to_ptr.hbm [resolvable:$true] %s774_s10 }
  0x38   : > { %296 = vmatpush.msra.mxu0 %v261_v5  ;;  %s776_s21 = scalar_lea.hbm %s775_s10, 8  ;;  %p781_p12 = scmp.lt.s32.totalorder %s775_s10, %s1068_s4 }
  0x39   : > { %317 = vmatpush.msra.mxu1 %v259_v6  ;;  %335 = vmatpush.msra.mxu2 %v266_v19  ;;  %p777_p1 = scmp.ne.s32.totalorder %s775_s10, %s776_s21  ;;  %p782_p7 = scmp.lt.s32.totalorder %s780_s22, %s776_s21 }
  0x3a   : > { %297 = vmatpush.msra.mxu0 %v258_v7  ;;  %583 = vmatmul.msk.f32.vlgmr.msra.gmra.mxu1 %vm278_vm0, %v257_v8 }
  0x3b   : > { %582 = vmatmul.msk.f32.vlgmr.msra.gmra.mxu0 %vm278_vm0, %v257_v8  ;;  %336 = vmatpush.msra.mxu2 %v263_v20  ;;  %p778_p3 = pnand %p777_p1, %p962_p4  ;;  %p783_p8 = por %p782_p7, %p781_p12 }
  0x3d   : > { %337 = vmatpush.msra.mxu2 %v260_v21  ;;  %p779_p5 = pneg %p778_p3 }
  0x3e   : > { %584 = vmatmul.msk.f32.vlgmr.msra.gmra.mxu2 %vm278_vm0, %v257_v8 }
  0x3f   : > { %p784_p9 = pnand %p783_p8, %p779_p5 }
  0xb7   : > { %v319_v12 = vpop.f32.mrf.mxu1 }
  0xb8   : > { %v299_v13 = vpop.f32.mrf.mxu0  ;;  %v320_v14 = vadd.f32 %v319_v12, %v273_v10 }
  0xb9   : > { %v300_v15 = vadd.f32 %v299_v13, %v272_v11 }
  0xba   : > { %357 = vmatpush.xpose.msra.mxu3 %v320_v14 }
  0xbd   : > { %358 = vmatmul.f32.vlgmr.msra.gmra.mxu3 %v300_v15 }
  0xc1   : > { %v339_v28 = vpop.f32.mrf.mxu2 }
  0xc2   : > { %v340_v29 = vadd.f32 %v339_v28, %v274_v27 }
  0xc4   : > { %405 = vmatpush.msrb.mxu3 %v340_v29 }
 0x140   : > { %v359_v17 = vpop.f32.mrf.mxu3 }
 0x141   : > { %v363_v18 = vsel %vm362_vm1, %v359_v17, -inf }
 0x142   : > { %364 = vmax.xlane.f32.xlu0 %v363_v18 }
 0x1b5   : > { %v365_v22 = vpop.xlane.xlu0 %364 }
 0x1b6   : > { %v366_v23 = vsub.f32 %v359_v17, %v365_v22 }
 0x1b8   : > { %v367_v24 = vmul.f32 1.442695, %v366_v23 }
 0x1ba   : > { %666 = vpow2.f32 %v367_v24 }
 0x1c0   : > { %v667_v25 = vpop.eup %666 }
 0x1c1   : > { %v369_v26 = vsel %vm362_vm1, %v667_v25, 0.0 }
 0x1c2   : > { %370 = vadd.xlane.f32.xlu0 %v369_v26 }
 0x235   : > { %v371_v30 = vpop.xlane.xlu0 %370 }
 0x236   : > { %668 = vrcp.f32 %v371_v30  ;;  %v383_v34 = vand.u32 2147483648, %v371_v30  ;;  %v381_v36 = vand.u32 2147483647, %v371_v30  ;;  %vm377_vm3 = vweird.f32 %v371_v30 }
 0x238   : > { %v384_v38 = vor.u32 1.1754944e-38, %v383_v34  ;;  %vm382_vm5 = vcmp.eq.f32.partialorder %v381_v36, 8.507059e+37 }
 0x23c   : > { %v669_v31 = vpop.eup %668 }
 0x23d   : > { %v373_v32 = vmul.f32 %v669_v31, %v371_v30  ;;  %vm378_vm2 = vweird.f32 %v669_v31 }
 0x23e   : > { %vm379_vm4 = vmor %vm377_vm3, %vm378_vm2 }
 0x23f   : > { %v374_v33 = vsub.f32 1.0, %v373_v32 }
 0x241   : > { %v375_v35 = vmul.f32 %v669_v31, %v374_v33 }
 0x243   : > { %v376_v37 = vadd.f32 %v669_v31, %v375_v35 }
 0x245   : > { %v380_v39 = vsel %vm379_vm4, %v669_v31, %v376_v37 }
 0x246   : > { %v385_v40 = vsel %vm382_vm5, %v384_v38, %v380_v39 }
 0x247   : > { %v386_v41 = vmul.f32 %v667_v25, %v385_v40 }
 0x249   : > { %585 = vmatmul.msk.f32.vlgmr.msrb.gmra.mxu3 %vm362_vm1, %v386_v41  ;;  %411 = vst.msk [vmem:[%s256_s23] sm:$0xff] %vm362_vm1, %v386_v41 }
 0x24a   : > { %787 = shalt.err (!%p784_p9)
}
 0x24b   : > { %603 = dma.vmem_to_hbm [thread:$0]  (%p962_p4), %s445_s6, 128, %s447_s7, %s418_s9  }
 0x24c   : > { %s428_s29 = scalar_lea.hbm %s1067_s3, %s588_s13  ;;  %s249_s30 = scalar_lea.vmem [#allocation8], %s996_s26 }
 0x24d   : > { %s430_s5 = sshll.u32 %s249_s30, 4  ;;  %s432_s24 = sshll.u32 %s428_s29, 4  ;;  %s431_s5 = int_to_ptr.vmem [resolvable:$true] %s430_s5  ;;  %s433_s24 = int_to_ptr.hbm [resolvable:$true] %s432_s24 }
 0x24e   : > { %s413_s10 = scalar_lea.sflag [#allocation4], %s993_s14  ;;  %s802_s21 = sshra.s32 %s433_s24, 4  ;;  %s803_s21 = int_to_ptr.hbm [resolvable:$true] %s802_s21 }
 0x24f   : > { %s804_s25 = scalar_lea.hbm %s803_s21, 8  ;;  %s808_s9 = scalar_lea.hbm %s1067_s3, 16 }
 0x250   : > { %p805_p10 = scmp.ne.s32.totalorder %s803_s21, %s804_s25  ;;  %p809_p0 = scmp.lt.s32.totalorder %s803_s21, %s1067_s3 }
 0x251   : > { %p810_p2 = scmp.lt.s32.totalorder %s808_s9, %s804_s25 }
 0x252   : > { %p806_p13 = pnand %p805_p10, %p962_p4 }
 0x253   : > { %p811_p1 = por %p810_p2, %p809_p0 }
 0x254   : > { %p807_p11 = pneg %p806_p13 }
 0x256   : > { %p812_p3 = pnand %p811_p1, %p807_p11 }
 0x2cc   : > { %v407_v42 = vpop.f32.mrf.mxu3 }
 0x2cd   : > { %410 = vst [vmem:[%s249_s30] sm:$0xff] %v407_v42 }
 0x2ce   : > { %815 = shalt.err (!%p812_p3)
}
 0x2cf   : > { %602 = dma.vmem_to_hbm [thread:$0]  (%p962_p4), %s431_s5, 128, %s433_s24, %s413_s10  }
 0x2d0 PF: > { %s458_s14 = sand.u32 1, %s850_s15   ;;  %p1075_p5 = scmp.ge.s32.totalorder %s862_s18, 2 }
 0x2d1   : > { %s459_s22 = scalar_lea.sflag [#allocation4], %s458_s14 }
 0x2d2   : > { %p618_p12 = pnand %p1075_p5, %p966_p6 }
 0x2d4   : > { %p619_p7 = pneg %p618_p12 }
 0x2d6   : > { %841 = dma.done.wait (%p619_p7), %s459_s22, 128  }
 0x2d7   : > { %843 = vsyncadd (%p619_p7), %s459_s22, 4294967168  ;;  %s469_s12 = scalar_lea.sflag [#allocation10], %s458_s14 }
 0x2d8   : > { %845 = dma.done.wait (%p619_p7), %s469_s12, 128  }
 0x2d9   : > { %847 = vsyncadd (%p619_p7), %s469_s12, 4294967168  ;;  %p22_p4 = scmp.ge.s32.totalorder %s936_s8, 4   ;;  %s1076_s15 = smov %s854_s16 }
 0x2da   : > { %s1077_s16 = smov %s858_s17  ;;  %s1078_s17 = smov %s947_s11 }
 0x2db   : > { %s1079_s18 = smov %s936_s8  ;;  %24 = sbr.rel (!%p22_p4) target bundleno = 8 (0x8), region = 102 }
 0x2e0   :  { %475 = vsyncpa [#allocation3], 1 }
 0x2e1   :  { %477 = vsyncpa [#allocation3 + $0x1], 1 }
 0x2e2   :  { %478 = vsyncpa [#allocation6], 1 }
 0x2e3   :  { %479 = vsyncpa [#allocation4], 1 }
 0x2e4   :  { %481 = vsyncpa [#allocation4 + $0x1], 1 }
 0x2e5   :  { %482 = vsyncpa [#allocation10], 1 }
 0x2e6   :  { %484 = vsyncpa [#allocation10 + $0x1], 1 }

</bundles_post_ra>
